<compile_context>
chip_gen: v7x
topology: tpu7x:2x2x1
jax: 0.10.0
libtpu: 0.0.40
codegen_flags: <defaults>
</compile_context>

<pallas_src>
import functools

import jax
import jax.numpy as jnp
from jax import lax
from jax.experimental import pallas as pl
from jax.experimental.pallas import tpu as pltpu


def _round_up(x, m):
    return ((x + m - 1) // m) * m


def _gen_tile_params():
    """Return (adjacency block byte target, VMEM budget) per TPU generation."""
    try:
        kind = jax.devices()[0].device_kind.lower()
    except Exception:  # pragma: no cover - defensive
        kind = ""
    if "v7" in kind or "7x" in kind:
        # ~3.2 TB/s HBM per TC -> needs the biggest blocks, but only 64 MiB
        # physical / 32 MiB scoped VMEM.
        return 8 << 20, 28 << 20
    if "v6" in kind:
        # ~1.4 TB/s HBM, 32 MiB scoped default.
        return 4 << 20, 28 << 20
    # v5e (16 MiB scoped default) and older/unknown chips: 4 MiB blocks already
    # reach roofline at <= 0.82 TB/s; stay under the 16 MiB default.
    return 4 << 20, 14 << 20


def _accumulate_lane_groups(adj_ref, acc_ref, *, col0, tile_k, n_valid, masked):
    """acc_ref (tile_n, 128) f32 += 128-wide lane groups of the current src tile.

    Pure VPU work (upcast + add); the single cross-lane reduce happens once in
    the epilogue.  col0 / tile_k / n_valid are static Python ints, so fully
    out-of-bounds lane groups are skipped entirely and only the one straddling
    group (ragged N) pays a compare+select.
    """
    for j in range(0, tile_k, 128):
        start = col0 + j
        if masked and start >= n_valid:
            break                                  # fully OOB group: never read
        grp = adj_ref[:, j:j + 128]
        if not jnp.issubdtype(grp.dtype, jnp.floating):
            grp = grp.astype(jnp.int32)            # int8 path: i8 -> i32 -> f32
        grp = grp.astype(jnp.float32)
        if masked and start + 128 > n_valid:       # straddling group: mask garbage
            lane = lax.broadcasted_iota(jnp.int32, grp.shape, 1)
            grp = jnp.where(lane < (n_valid - start), grp, 0.0)
        acc_ref[...] += grp


def _epilogue(acc_ref, w_ref, b_ref, out_ref):
    deg = jnp.sum(acc_ref[...], axis=1, keepdims=True)      # one XLU reduce
    out_ref[...] = deg * w_ref[...] + b_ref[...]             # Linear(1, out_dim)


def _single_pass_kernel(adj_ref, w_ref, b_ref, out_ref, acc_ref, *, n_valid, tile_k):
    # 1-D grid: the whole src extent is one block -> no reduction bookkeeping.
    acc_ref[...] = jnp.zeros_like(acc_ref)
    _accumulate_lane_groups(adj_ref, acc_ref, col0=0, tile_k=tile_k,
                            n_valid=n_valid, masked=(tile_k > n_valid))
    _epilogue(acc_ref, w_ref, b_ref, out_ref)


def _multi_pass_kernel(adj_ref, w_ref, b_ref, out_ref, acc_ref, *,
                       n_valid, tile_k, n_k):
    k = pl.program_id(1)

    @pl.when(k == 0)
    def _():
        acc_ref[...] = jnp.zeros_like(acc_ref)

    last_col0 = (n_k - 1) * tile_k
    last_ragged = (n_valid - last_col0) < tile_k             # static

    if last_ragged:
        @pl.when(k < n_k - 1)
        def _():  # steady state: unmasked, pure VPU adds hidden under the DMA
            _accumulate_lane_groups(adj_ref, acc_ref, col0=0, tile_k=tile_k,
                                    n_valid=n_valid, masked=False)

        @pl.when(k == n_k - 1)
        def _():  # last src tile: mask the garbage columns past N
            _accumulate_lane_groups(adj_ref, acc_ref, col0=last_col0,
                                    tile_k=tile_k, n_valid=n_valid, masked=True)
    else:
        _accumulate_lane_groups(adj_ref, acc_ref, col0=0, tile_k=tile_k,
                                n_valid=n_valid, masked=False)

    @pl.when(k == n_k - 1)
    def _():
        _epilogue(acc_ref, w_ref, b_ref, out_ref)


def centrality_encoding(adj_ds, weight, bias, *, tile_n=None, tile_k=None):
    """Fused in-degree + Linear(1, out_dim).

    adj_ds : [N, N] dense adjacency in [dst, src] layout (row-sum == in-degree).
             bf16 / int8 halve / quarter HBM traffic vs f32; accumulation is f32
             so 0/1 degrees stay exact.  bf16/int8 are only exact for
             unweighted (0/1) adjacencies - pass f32 for weighted graphs.
    weight : [out_dim, 1]   (torch nn.Linear(1, out_dim).weight)
    bias   : [out_dim]
    """
    N = int(adj_ds.shape[0])
    out_dim = int(weight.shape[0])
    itemsize = adj_ds.dtype.itemsize
    lane = 128
    sub = {1: 32, 2: 16}.get(itemsize, 8)          # sublane packing per dtype

    out_pad = _round_up(out_dim, lane)             # lane-dense output slab
    k_full = _round_up(N, lane)

    block_target, vmem_budget = _gen_tile_params()

    # Node (row) tile: as large as possible, but keep >= 2 row tiles so the
    # "parallel" axis can shard across v7x's two TensorCores.
    if tile_n is None:
        tile_n = min(512, _round_up(max(1, -(-N // 2)), sub), _round_up(N, sub))
    else:
        tile_n = min(_round_up(int(tile_n), sub), _round_up(N, sub))
    tile_n = max(tile_n, sub)

    # Src (reduction) tile: multi-MiB blocks so each grid step is HBM-bound,
    # sized to the per-generation VMEM budget (adjacency double-buffered +
    # output double-buffered + f32 accumulator scratch).
    out_blk_bytes = tile_n * out_pad * 4
    acc_bytes = tile_n * lane * 4
    fixed_bytes = 2 * out_blk_bytes + acc_bytes + 4 * out_pad * 4
    k_budget = max(lane, ((vmem_budget - fixed_bytes) // (2 * tile_n * itemsize))
                   // lane * lane)
    if tile_k is None:
        tile_k = max(lane, (block_target // (tile_n * itemsize)) // lane * lane)
    else:
        tile_k = max(lane, _round_up(int(tile_k), lane))
    tile_k = min(tile_k, k_full, k_budget)

    n_rows = -(-N // tile_n)
    n_k = -(-N // tile_k)

    w_row = jnp.zeros((1, out_pad), jnp.float32).at[0, :out_dim].set(
        weight.reshape(out_dim).astype(jnp.float32))
    b_row = jnp.zeros((1, out_pad), jnp.float32).at[0, :out_dim].set(
        bias.reshape(out_dim).astype(jnp.float32))

    vmem_needed = 2 * tile_n * tile_k * itemsize + fixed_bytes
    compiler_params = pltpu.CompilerParams(
        dimension_semantics=("parallel",) if n_k == 1 else ("parallel", "arbitrary"),
        vmem_limit_bytes=int(max(vmem_needed + (4 << 20), 16 << 20)),
    )
    cost = pl.CostEstimate(
        flops=N * N + 2 * N * out_pad,
        transcendentals=0,
        bytes_accessed=N * N * itemsize + N * out_pad * 4 + 2 * out_pad * 4,
    )

    if n_k == 1:
        kernel = functools.partial(_single_pass_kernel, n_valid=N, tile_k=tile_k)
        grid_spec = pltpu.PrefetchScalarGridSpec(
            num_scalar_prefetch=0,
            grid=(n_rows,),
            in_specs=[
                pl.BlockSpec((tile_n, tile_k), lambda i: (i, 0)),   # adjacency
                pl.BlockSpec((1, out_pad), lambda i: (0, 0)),       # weight row
                pl.BlockSpec((1, out_pad), lambda i: (0, 0)),       # bias row
            ],
            out_specs=pl.BlockSpec((tile_n, out_pad), lambda i: (i, 0)),
            scratch_shapes=[pltpu.VMEM((tile_n, lane), jnp.float32)],
        )
    else:
        kernel = functools.partial(_multi_pass_kernel, n_valid=N,
                                   tile_k=tile_k, n_k=n_k)
        grid_spec = pltpu.PrefetchScalarGridSpec(
            num_scalar_prefetch=0,
            grid=(n_rows, n_k),
            in_specs=[
                pl.BlockSpec((tile_n, tile_k), lambda i, k: (i, k)),
                pl.BlockSpec((1, out_pad), lambda i, k: (0, 0)),
                pl.BlockSpec((1, out_pad), lambda i, k: (0, 0)),
            ],
            out_specs=pl.BlockSpec((tile_n, out_pad), lambda i, k: (i, 0)),
            scratch_shapes=[pltpu.VMEM((tile_n, lane), jnp.float32)],
        )

    out = pl.pallas_call(
        kernel,
        out_shape=jax.ShapeDtypeStruct((N, out_pad), jnp.float32),
        grid_spec=grid_spec,
        compiler_params=compiler_params,
        cost_estimate=cost,
    )(adj_ds, w_row, b_row)

    # out_dim << 128: keep the lane-dense slab in the kernel (unmasked vst) and
    # pay the cheap wrapper-side slice.
    return out[:, :out_dim]


if __name__ == "__main__":
    key = jax.random.PRNGKey(0)
    k_adj, k_w, k_b = jax.random.split(key, 3)

    N = 200          # ragged on purpose: not a multiple of any tile size
    OUT_DIM = 32     # Linear(1, out_dim)

    # Deterministic synthetic graph as a dense [dst, src] adjacency
    # (adj_ds[j, i] == 1 iff edge i -> j), no self loops.
    adj_f32 = (jax.random.uniform(k_adj, (N, N)) < 0.3).astype(jnp.float32)
    adj_f32 = adj_f32 * (1.0 - jnp.eye(N, dtype=jnp.float32))
    adj_bf16 = adj_f32.astype(jnp.bfloat16)   # 0/1 exact in bf16; half the HBM bytes
    adj_int8 = adj_f32.astype(jnp.int8)       # quarter the HBM bytes
    # TODO(synk): dgl_graph.in_degrees() has no Pallas equivalent; the graph is
    # supplied as a dense [dst, src] adjacency instead.

    # Deterministic Linear(1, out_dim) params.
    weight = jax.random.uniform(k_w, (OUT_DIM, 1), minval=-1.0, maxval=1.0,
                                dtype=jnp.float32)
    bias = jax.random.uniform(k_b, (OUT_DIM,), minval=-1.0, maxval=1.0,
                              dtype=jnp.float32)

    # Pure-JAX reference of the torch forward pass.
    deg_ref = jnp.sum(adj_f32, axis=1, keepdims=True)     # in_degrees [N, 1]
    ref = deg_ref @ weight.T + bias[None, :]              # Linear(1, out_dim)

    # 1) auto tiling (at this N: single src pass, 1-D grid, ragged src masking).
    out = jax.block_until_ready(centrality_encoding(adj_bf16, weight, bias))
    assert out.shape == (N, OUT_DIM)
    assert jnp.allclose(out, ref, atol=1e-5, rtol=1e-5), "auto-tile mismatch"

    # 2) forced small tiles: exercises the multi-step reduction path
    #    (2-D grid, accumulator scratch, masked last src tile, partial row tiles).
    out2 = jax.block_until_ready(
        centrality_encoding(adj_bf16, weight, bias, tile_n=64, tile_k=128))
    assert jnp.allclose(out2, ref, atol=1e-5, rtol=1e-5), "multi-pass mismatch"

    # 3) int8 adjacency path (2x fewer HBM bytes than bf16, 4x vs f32).
    out3 = jax.block_until_ready(centrality_encoding(adj_int8, weight, bias))
    assert jnp.allclose(out3, ref, atol=1e-5, rtol=1e-5), "int8 mismatch"

    print("KERNEL_OK")
</pallas_src>

<mosaic_0001>
module attributes {stable_mosaic.version = 11 : i64} {
  func.func @_single_pass_kernel(%arg0: i32, %arg1: memref<112x256xbf16, #tpu.memory_space<vmem>>, %arg2: memref<1x128xf32, #tpu.memory_space<vmem>>, %arg3: memref<1x128xf32, #tpu.memory_space<vmem>>, %arg4: memref<112x128xf32, #tpu.memory_space<vmem>>, %arg5: memref<112x128xf32, #tpu.memory_space<vmem>>) attributes {dimension_semantics = [#tpu.dimension_semantics<parallel>], iteration_bounds = array<i64: 2>, scalar_prefetch = 0 : i64, scratch_operands = 1 : i64, tpu.core_type = #tpu.core_type<tc>, window_params = [{transform_indices = @transform_0, window_bounds = array<i64: 112, 256>}, {pipeline_mode = #tpu.pipeline_mode<synchronous>, transform_indices = @transform_1, window_bounds = array<i64: 1, 128>}, {pipeline_mode = #tpu.pipeline_mode<synchronous>, transform_indices = @transform_2, window_bounds = array<i64: 1, 128>}, {transform_indices = @transform_3, window_bounds = array<i64: 112, 128>}]} {
    %cst = arith.constant 0.000000e+00 : f32
    %0 = vector.broadcast %cst : f32 to vector<112x128xf32>
    %c0 = arith.constant 0 : index
    %c0_0 = arith.constant 0 : index
    %1 = vector.load %arg5[%c0, %c0_0] : memref<112x128xf32, #tpu.memory_space<vmem>>, vector<112x128xf32>
    tpu.vector_store %arg5[%c0, %c0_0], %0 {strides = array<i32>} : memref<112x128xf32, #tpu.memory_space<vmem>>, vector<112x128xf32>,
    %c0_1 = arith.constant 0 : index
    %c0_2 = arith.constant 0 : index
    %2 = vector.load %arg1[%c0_1, %c0_2] : memref<112x256xbf16, #tpu.memory_space<vmem>>, vector<112x128xbf16>
    %3 = arith.extf %2 : vector<112x128xbf16> to vector<112x128xf32>
    %c0_3 = arith.constant 0 : index
    %c0_4 = arith.constant 0 : index
    %4 = vector.load %arg5[%c0_3, %c0_4] : memref<112x128xf32, #tpu.memory_space<vmem>>, vector<112x128xf32>
    %5 = arith.addf %4, %3 : vector<112x128xf32>
    %c0_5 = arith.constant 0 : index
    %c0_6 = arith.constant 0 : index
    %6 = vector.load %arg5[%c0_5, %c0_6] : memref<112x128xf32, #tpu.memory_space<vmem>>, vector<112x128xf32>
    tpu.vector_store %arg5[%c0_5, %c0_6], %5 {strides = array<i32>} : memref<112x128xf32, #tpu.memory_space<vmem>>, vector<112x128xf32>,
    %c0_7 = arith.constant 0 : index
    %c128 = arith.constant 128 : index
    %7 = vector.load %arg1[%c0_7, %c128] : memref<112x256xbf16, #tpu.memory_space<vmem>>, vector<112x128xbf16>
    %8 = arith.extf %7 : vector<112x128xbf16> to vector<112x128xf32>
    %9 = tpu.iota {dimensions = array<i32: 1>} : vector<112x128xi32>
    %c72_i32 = arith.constant 72 : i32
    %10 = vector.broadcast %c72_i32 : i32 to vector<112x128xi32>
    %11 = arith.cmpi slt, %9, %10 : vector<112x128xi32>
    %cst_8 = arith.constant 0.000000e+00 : f32
    %12 = vector.broadcast %cst_8 : f32 to vector<112x128xf32>
    %13 = arith.select %11, %8, %12 : vector<112x128xi1>, vector<112x128xf32>
    %c0_9 = arith.constant 0 : index
    %c0_10 = arith.constant 0 : index
    %14 = vector.load %arg5[%c0_9, %c0_10] : memref<112x128xf32, #tpu.memory_space<vmem>>, vector<112x128xf32>
    %15 = arith.addf %14, %13 : vector<112x128xf32>
    %c0_11 = arith.constant 0 : index
    %c0_12 = arith.constant 0 : index
    %16 = vector.load %arg5[%c0_11, %c0_12] : memref<112x128xf32, #tpu.memory_space<vmem>>, vector<112x128xf32>
    tpu.vector_store %arg5[%c0_11, %c0_12], %15 {strides = array<i32>} : memref<112x128xf32, #tpu.memory_space<vmem>>, vector<112x128xf32>,
    %c0_13 = arith.constant 0 : index
    %c0_14 = arith.constant 0 : index
    %17 = vector.load %arg5[%c0_13, %c0_14] : memref<112x128xf32, #tpu.memory_space<vmem>>, vector<112x128xf32>
    %cst_15 = arith.constant dense<0.000000e+00> : vector<112xf32>
    %18 = vector.multi_reduction <add>, %17, %cst_15 [1] : vector<112x128xf32> to vector<112xf32>
    %19 = vector.shape_cast %18 : vector<112xf32> to vector<112x1xf32>
    %c0_16 = arith.constant 0 : index
    %c0_17 = arith.constant 0 : index
    %20 = vector.load %arg2[%c0_16, %c0_17] : memref<1x128xf32, #tpu.memory_space<vmem>>, vector<1x128xf32>
    %21 = vector.broadcast %19 : vector<112x1xf32> to vector<112x128xf32>
    %22 = vector.broadcast %20 : vector<1x128xf32> to vector<112x128xf32>
    %23 = arith.mulf %21, %22 : vector<112x128xf32>
    %c0_18 = arith.constant 0 : index
    %c0_19 = arith.constant 0 : index
    %24 = vector.load %arg3[%c0_18, %c0_19] : memref<1x128xf32, #tpu.memory_space<vmem>>, vector<1x128xf32>
    %25 = vector.broadcast %24 : vector<1x128xf32> to vector<112x128xf32>
    %26 = arith.addf %23, %25 : vector<112x128xf32>
    %c0_20 = arith.constant 0 : index
    %c0_21 = arith.constant 0 : index
    %27 = vector.load %arg4[%c0_20, %c0_21] : memref<112x128xf32, #tpu.memory_space<vmem>>, vector<112x128xf32>
    tpu.vector_store %arg4[%c0_20, %c0_21], %26 {strides = array<i32>} : memref<112x128xf32, #tpu.memory_space<vmem>>, vector<112x128xf32>,
    return
  }
  func.func @transform_0(%arg0: i32) -> (i32, i32) {
    %c0_i32 = arith.constant 0 : i32
    %c0_i32_0 = arith.constant 0 : i32
    return %arg0, %c0_i32 : i32, i32
  }
  func.func @transform_1(%arg0: i32) -> (i32, i32) {
    %c0_i32 = arith.constant 0 : i32
    %c0_i32_0 = arith.constant 0 : i32
    %c0_i32_1 = arith.constant 0 : i32
    return %c0_i32, %c0_i32_0 : i32, i32
  }
  func.func @transform_2(%arg0: i32) -> (i32, i32) {
    %c0_i32 = arith.constant 0 : i32
    %c0_i32_0 = arith.constant 0 : i32
    %c0_i32_1 = arith.constant 0 : i32
    return %c0_i32, %c0_i32_0 : i32, i32
  }
  func.func @transform_3(%arg0: i32) -> (i32, i32) {
    %c0_i32 = arith.constant 0 : i32
    %c0_i32_0 = arith.constant 0 : i32
    return %arg0, %c0_i32 : i32, i32
  }
}

</mosaic_0001>

<bundles_post_ra>
// kernel: tpu_custom_call.1
= control target key start
LH: loop header
LB: loop body
LE: loop exit
PB: predicated region body
PF: predicated region fallthrough
CT: control target
= control target key end

     0   :  { %8 = vsyncpa [#allocation4], 0  ;;  %s1006_s0 = inlined_call_operand.hbm [shape: bf16[200,200], index: 0, kind: input, shape index: {}]   ;;  %s1007_s1 = inlined_call_operand.vmem [shape: f32[1,128], index: 1, kind: input, shape index: {}]   ;;  %s1008_s2 = inlined_call_operand.vmem [shape: f32[1,128], index: 2, kind: input, shape index: {}]   ;;  %s1009_s3 = inlined_call_operand.hbm [shape: f32[200,128], index: 3, kind: output, shape index: {}]  }
   0x1   :  { %10 = vsyncpa [#allocation4 + $0x1], 0 }
   0x2   :  { %11 = vsyncpa [#allocation5], 0 }
   0x3   :  { %13 = vsyncpa [#allocation5 + $0x1], 0  ;;  %s762_s12 = smov 0   ;;  %s764_s13 = smov 0  }
   0x4   :  { %s766_s14 = smov 0   ;;  %s768_s15 = smov 0  }
   0x5 LB: > { %s783_s16 = sadd.s32 4294967295, %s734_s15   ;;  %s570_s17 = sadd.s32 4294967294, %s734_s15   ;;  %s734_s15 = sphi %s768_s15, %s1019_s15   ;;  %s730_s14 = sphi %s766_s14, %s1018_s14   ;;  %s726_s13 = sphi %s764_s13, %s1017_s13   ;;  %s722_s12 = sphi %s762_s12, %s1016_s12  }
   0x6   : > { %s787_s18 = sadd.s32 1, %s734_s15   ;;  %s26_s19 = sadd.s32 1, %s730_s14 }
   0x7   : > { %s23_s20 = ssub.s32 %s734_s15, %s787_s18  ;;  %p33_p0 = scmp.ne.s32.totalorder %s730_s14, %s726_s13 }
   0x8   : > { %p24_p1 = scmp.eq.s32.totalorder %s23_s20, 0  ;;  %p34_p2 = scmp.eq.s32.totalorder %s734_s15, 0 }
   0x9   : > { %p39_p3 = scmp.ne.s32.totalorder %s726_s13, %s722_s12  ;;  %p40_p4 = scmp.eq.s32.totalorder %s783_s16, 0 }
   0xa   : > { %s799_s21 = scalar_select %p24_p1, %s730_s14, %s26_s19  }
   0xb   : > { %p35_p5 = por %p34_p2, %p33_p0  ;;  %p801_p6 = por %p40_p4, %p39_p3 }
   0xc   : > { %p105_p7 = scmp.eq.s32.totalorder %s783_s16, 1  ;;  %p111_p8 = scmp.eq.s32.totalorder %s570_s17, 1 }
   0xd   : > { %p1010_p11 = scmp.ge.s32.totalorder %s734_s15, 2 }
   0xe   : > { %p806_p9 = por %p105_p7, %p33_p0  ;;  %p810_p10 = por %p111_p8, %p39_p3 }
   0xf   : > { %133 = sbr.rel (%p1010_p11) target bundleno = 57 (0x39), region = 24 }
  0x10   : > { %s1013_s24 = scalar_select %p810_p10, 1, 0 }
  0x16   : > { %136 = sbr.rel (!%p35_p5) target bundleno = 57 (0x39), region = 28  ;;  %s137_s25 = sand.u32 (%p35_p5), 1, %s730_s14  }
  0x17   : > { %s142_s26 = smul.u32 (%p35_p5), 14, %s734_s15  ;;  %s822_s4 = scalar_lea.sflag (%p35_p5), [#allocation4], %s137_s25 }
  0x18   : > { %s595_s27 = smul.u32 (%p35_p5), 112, %s137_s25 }
  0x19   : > { %s143_s28 = ssub.s32 (%p35_p5), 25, %s142_s26 }
  0x1a   : > { %p144_p12 = scmp.lt.s32.totalorder (%p35_p5), %s143_s28, 14  ;;  %s141_s5 = scalar_lea.vmem (%p35_p5), [#allocation3], %s595_s27 }
  0x1d   : > { %s1021_s28 = smov (!%p144_p12, %s143_s28), 14 }
  0x1e   : > { %s819_s29 = sshll.u32 %s1021_s28, 7 }
  0x1f   : > { %s149_s30 = ssub.s32 1792, %s819_s29 }
  0x20   : > { %150 = vsyncadd %s822_s4, %s149_s30  ;;  %p575_p13 = scmp.ne.s32.totalorder %s819_s29, 0  ;;  %s594_s6 = smul.u32 1792, %s734_s15 }
  0x21   : > { %s156_s7 = sshll.u32 %s141_s5, 4  ;;  %s644_s20 = scalar_lea.hbm %s1006_s0, 3200  ;;  %s832_s7 = int_to_ptr.vmem [resolvable:$true] %s156_s7 }
  0x22   : > { %s830_s10 = scalar_lea.hbm %s1006_s0, %s594_s6 }
  0x23   : > { %s640_s11 = scalar_lea.hbm %s830_s10, %s819_s29  ;;  %p645_p3 = scmp.lt.u32.totalorder %s830_s10, %s1006_s0 }
  0x24   : > { %p641_p0 = scmp.ne.s32.totalorder %s830_s10, %s640_s11  ;;  %p646_p4 = scmp.lt.u32.totalorder %s644_s20, %s640_s11 }
  0x25   : > { %p648_p7 = scmp.lt.u32.totalorder %s640_s11, %s830_s10 }
  0x26   : > { %p642_p1 = pnand %p641_p0, %p575_p13  ;;  %p647_p5 = por %p646_p4, %p645_p3 }
  0x28   : > { %p643_p2 = pneg %p642_p1  ;;  %p649_p8 = por %p648_p7, %p647_p5 }
  0x2a   : > { %p650_p12 = pnand %p649_p8, %p643_p2 }
  0x2c   : > { %653 = shalt.err (!%p650_p12)
}
  0x2d   : > { %s654_s27 = scalar_lea.vmem %s832_s7, %s819_s29  ;;  %s736_s28 = smov [#allocation3]  }
  0x2e   : > { %p655_p0 = scmp.ne.s32.totalorder %s832_s7, %s654_s27  ;;  %s658_s30 = sshll.u32 %s736_s28, 4  ;;  %s659_s30 = int_to_ptr.vmem [resolvable:$false] %s658_s30 }
  0x2f   : > { %s660_s5 = scalar_lea.vmem %s659_s30, 3584  ;;  %p661_p10 = scmp.lt.s32.totalorder %s832_s7, %s659_s30 }
  0x30   : > { %p656_p1 = pnand %p655_p0, %p575_p13  ;;  %p662_p3 = scmp.lt.s32.totalorder %s660_s5, %s654_s27 }
  0x32   : > { %p657_p11 = pneg %p656_p1  ;;  %p663_p4 = por %p662_p3, %p661_p10 }
  0x34   : > { %p664_p5 = pnand %p663_p4, %p657_p11 }
  0x36   : > { %667 = shalt.err (!%p664_p5)
}
  0x37   : > { %s737_s6 = smov 128   ;;  %s738_s8 = smov 8  }
  0x38   : > { %162 = dma.hbm_to_vmem [thread:$0]  (%p575_p13), %s830_s10, %s819_s29, %s832_s7, %s822_s4, %s737_s6, %s737_s6, %s738_s8  }
  0x39 PF: > { %p580_p2 = scmp.ge.s32.totalorder %s734_s15, 1  ;;  %p164_p7 = scmp.lt.s32.totalorder %s734_s15, 3 }
  0x3b   : > { %p165_p8 = pnand %p580_p2, %p164_p7 }
  0x3c   : > { %s862_s9 = sand.u32 (!%p165_p8), 1, %s726_s13  }
  0x3d   : > { %168 = sbr.rel (%p165_p8) target bundleno = 276 (0x114), region = 32  ;;  %s171_s17 = scalar_lea.sflag (!%p165_p8), [#allocation4], %s862_s9 }
  0x3e   : > { %s596_s11 = smul.u32 (!%p165_p8), 112, %s862_s9 }
  0x40   : > { %s868_s19 = scalar_lea.vmem (!%p165_p8), [#allocation3], %s596_s11 }
  0x44   : > { %713 = dma.done.wait (%p801_p6), %s171_s17, 1792  }
  0x45   : > { %715 = vsyncadd (%p801_p6), %s171_s17, 4294965504  ;;  %v320_v0 = vlaneseq  ;;  %v224_v2 = vld [vmem:[%s868_s19 + $0x10] sm:$0xff]   ;;  %v222_v3 = vld [vmem:[%s868_s19] sm:$0xff]   ;;  %s927_s10 = scalar_lea.vmem [#allocation6], %s596_s11  ;;  %s478_s20 = scalar_lea.sflag [#allocation5], %s862_s9 }
  0x46   : > { %v225_v4 = vld [vmem:[%s868_s19 + $0x18] sm:$0xff]   ;;  %v238_v5 = vunpack.c.l.bf16 %v224_v2  ;;  %v308_v6 = vunpack.c.h.bf16 %v224_v2  ;;  %v236_v7 = vunpack.c.l.bf16 %v222_v3  ;;  %v306_v8 = vunpack.c.h.bf16 %v222_v3  ;;  %v223_v9 = vld [vmem:[%s868_s19 + $0x8] sm:$0xff]   ;;  %v226_v18 = vld [vmem:[%s868_s19 + $0x20] sm:$0xff]   ;;  %s485_s25 = smul.u32 (%p806_p9), 14, %s783_s16 }
  0x47   : > { %v874_v1 = vand.u32 127, %v320_v0  ;;  %v227_v10 = vld [vmem:[%s868_s19 + $0x28] sm:$0xff]   ;;  %v239_v11 = vunpack.c.l.bf16 %v225_v4  ;;  %v309_v12 = vunpack.c.h.bf16 %v225_v4  ;;  %v237_v13 = vunpack.c.l.bf16 %v223_v9  ;;  %v229_v23 = vld [vmem:[%s868_s19 + $0x38] sm:$0xff]   ;;  %v228_v24 = vld [vmem:[%s868_s19 + $0x30] sm:$0xff]  }
  0x48   : > { %v307_v14 = vunpack.c.h.bf16 %v223_v9  ;;  %v311_v17 = vunpack.c.h.bf16 %v227_v10  ;;  %v241_v25 = vunpack.c.l.bf16 %v227_v10  ;;  %v240_v28 = vunpack.c.l.bf16 %v226_v18  ;;  %v231_v34 = vld [vmem:[%s868_s19 + $0x48] sm:$0xff]   ;;  %v230_v35 = vld [vmem:[%s868_s19 + $0x40] sm:$0xff]   ;;  %v233_v44 = vld [vmem:[%s868_s19 + $0x58] sm:$0xff]   ;;  %s486_s26 = ssub.s32 (%p806_p9), 25, %s485_s25 }
  0x49   : > { %vm322_vm0 = vcmp.lt.s32.totalorder %v874_v1, 72  ;;  %v310_v29 = vunpack.c.h.bf16 %v226_v18  ;;  %v313_v31 = vunpack.c.h.bf16 %v229_v23  ;;  %v312_v32 = vunpack.c.h.bf16 %v228_v24  ;;  %v232_v45 = vld [vmem:[%s868_s19 + $0x50] sm:$0xff]   ;;  %v235_v54 = vld [vmem:[%s868_s19 + $0x68] sm:$0xff]   ;;  %v234_v55 = vld [vmem:[%s868_s19 + $0x60] sm:$0xff]   ;;  %p487_p6 = scmp.lt.s32.totalorder (%p806_p9), %s486_s26, 14 }
  0x4a   : > { %v325_v15 = vsel %vm322_vm0, %v308_v6, 0.0  ;;  %v323_v16 = vsel %vm322_vm0, %v306_v8, 0.0  ;;  %v326_v21 = vsel %vm322_vm0, %v309_v12, 0.0  ;;  %v324_v22 = vsel %vm322_vm0, %v307_v14, 0.0  ;;  %v581_v9 = vld [vmem:[%s1007_s1] ss:$0 sm:$0xff] }
  0x4b   : > { %v353_v19 = vadd.f32 %v325_v15, %v238_v5  ;;  %v351_v20 = vadd.f32 %v323_v16, %v236_v7  ;;  %v354_v26 = vadd.f32 %v326_v21, %v239_v11  ;;  %v352_v27 = vadd.f32 %v324_v22, %v237_v13  ;;  %v582_v10 = vld [vmem:[%s1008_s2] ss:$0 sm:$0xff] }
  0x4c   : > { %v328_v30 = vsel %vm322_vm0, %v311_v17, 0.0  ;;  %v327_v33 = vsel %vm322_vm0, %v310_v29, 0.0  ;;  %v243_v38 = vunpack.c.l.bf16 %v229_v23  ;;  %v242_v39 = vunpack.c.l.bf16 %v228_v24 }
  0x4d   : > { %397 = vadd.xlane.f32.xlu1 %v353_v19  ;;  %393 = vadd.xlane.f32.xlu0 %v351_v20  ;;  %v356_v36 = vadd.f32 %v328_v30, %v241_v25  ;;  %v355_v37 = vadd.f32 %v327_v33, %v240_v28  ;;  %v330_v40 = vsel %vm322_vm0, %v313_v31, 0.0  ;;  %v329_v41 = vsel %vm322_vm0, %v312_v32, 0.0 }
  0x4e   : > { %v315_v42 = vunpack.c.h.bf16 %v231_v34  ;;  %v314_v43 = vunpack.c.h.bf16 %v230_v35  ;;  %v358_v46 = vadd.f32 %v330_v40, %v243_v38  ;;  %v357_v47 = vadd.f32 %v329_v41, %v242_v39 }
  0x4f   : > { %v245_v48 = vunpack.c.l.bf16 %v231_v34  ;;  %v244_v49 = vunpack.c.l.bf16 %v230_v35  ;;  %v317_v52 = vunpack.c.h.bf16 %v233_v44  ;;  %v316_v53 = vunpack.c.h.bf16 %v232_v45 }
  0x50   : > { %v332_v50 = vsel %vm322_vm0, %v315_v42, 0.0  ;;  %v331_v51 = vsel %vm322_vm0, %v314_v43, 0.0  ;;  %v247_v58 = vunpack.c.l.bf16 %v233_v44  ;;  %v246_v59 = vunpack.c.l.bf16 %v232_v45 }
  0x51   : > { %399 = vadd.xlane.f32.xlu1 %v354_v26  ;;  %395 = vadd.xlane.f32.xlu0 %v352_v27  ;;  %v360_v56 = vadd.f32 %v332_v50, %v245_v48  ;;  %v359_v57 = vadd.f32 %v331_v51, %v244_v49  ;;  %v334_v60 = vsel %vm322_vm0, %v317_v52, 0.0  ;;  %v333_v61 = vsel %vm322_vm0, %v316_v53, 0.0 }
  0x52   : > { %v319_v62 = vunpack.c.h.bf16 %v235_v54  ;;  %v318_v63 = vunpack.c.h.bf16 %v234_v55  ;;  %v362_v0 = vadd.f32 %v334_v60, %v247_v58  ;;  %v361_v2 = vadd.f32 %v333_v61, %v246_v59 }
  0x53   : > { %v249_v3 = vunpack.c.l.bf16 %v235_v54  ;;  %v248_v4 = vunpack.c.l.bf16 %v234_v55 }
  0x54   : > { %v336_v5 = vsel %vm322_vm0, %v319_v62, 0.0  ;;  %v335_v6 = vsel %vm322_vm0, %v318_v63, 0.0 }
  0x55   : > { %403 = vadd.xlane.f32.xlu1 %v356_v36  ;;  %401 = vadd.xlane.f32.xlu0 %v355_v37  ;;  %v364_v7 = vadd.f32 %v336_v5, %v249_v3  ;;  %v363_v8 = vadd.f32 %v335_v6, %v248_v4 }
  0x59   : > { %407 = vadd.xlane.f32.xlu1 %v358_v46  ;;  %405 = vadd.xlane.f32.xlu0 %v357_v47 }
  0x5d   : > { %411 = vadd.xlane.f32.xlu1 %v360_v56  ;;  %409 = vadd.xlane.f32.xlu0 %v359_v57 }
  0x61   : > { %415 = vadd.xlane.f32.xlu1 %v362_v0  ;;  %413 = vadd.xlane.f32.xlu0 %v361_v2 }
  0x65   : > { %419 = vadd.xlane.f32.xlu1 %v364_v7  ;;  %417 = vadd.xlane.f32.xlu0 %v363_v8 }
  0xda   : > { %v398_v11 = vpop.xlane.xlu1 %397  ;;  %v394_v12 = vpop.xlane.xlu0 %393 }
  0xdb   : > { %v430_v13 = vmul.f32 %v581_v9, %v398_v11  ;;  %v428_v1 = vmul.f32 %v581_v9, %v394_v12 }
  0xdd   : > { %v451_v14 = vadd.f32 %v582_v10, %v430_v13  ;;  %v449_v15 = vadd.f32 %v582_v10, %v428_v1 }
  0xde   : > { %v400_v16 = vpop.xlane.xlu1 %399  ;;  %v396_v17 = vpop.xlane.xlu0 %395 }
  0xdf   : > { %465 = vst [vmem:[%s927_s10 + $0x10] sm:$0xff] %v451_v14  ;;  %463 = vst [vmem:[%s927_s10] sm:$0xff] %v449_v15  ;;  %v431_v18 = vmul.f32 %v581_v9, %v400_v16  ;;  %v429_v19 = vmul.f32 %v581_v9, %v396_v17 }
  0xe1   : > { %v452_v20 = vadd.f32 %v582_v10, %v431_v18  ;;  %v450_v21 = vadd.f32 %v582_v10, %v429_v19 }
  0xe2   : > { %v404_v22 = vpop.xlane.xlu1 %403  ;;  %v402_v23 = vpop.xlane.xlu0 %401 }
  0xe3   : > { %466 = vst [vmem:[%s927_s10 + $0x18] sm:$0xff] %v452_v20  ;;  %464 = vst [vmem:[%s927_s10 + $0x8] sm:$0xff] %v450_v21  ;;  %v433_v24 = vmul.f32 %v581_v9, %v404_v22  ;;  %v432_v25 = vmul.f32 %v581_v9, %v402_v23 }
  0xe5   : > { %v454_v26 = vadd.f32 %v582_v10, %v433_v24  ;;  %v453_v27 = vadd.f32 %v582_v10, %v432_v25 }
  0xe6   : > { %v408_v28 = vpop.xlane.xlu1 %407  ;;  %v406_v29 = vpop.xlane.xlu0 %405 }
  0xe7   : > { %468 = vst [vmem:[%s927_s10 + $0x28] sm:$0xff] %v454_v26  ;;  %467 = vst [vmem:[%s927_s10 + $0x20] sm:$0xff] %v453_v27  ;;  %v435_v30 = vmul.f32 %v581_v9, %v408_v28  ;;  %v434_v31 = vmul.f32 %v581_v9, %v406_v29 }
  0xe9   : > { %v456_v32 = vadd.f32 %v582_v10, %v435_v30  ;;  %v455_v33 = vadd.f32 %v582_v10, %v434_v31 }
  0xea   : > { %v412_v34 = vpop.xlane.xlu1 %411  ;;  %v410_v35 = vpop.xlane.xlu0 %409 }
  0xeb   : > { %470 = vst [vmem:[%s927_s10 + $0x38] sm:$0xff] %v456_v32  ;;  %469 = vst [vmem:[%s927_s10 + $0x30] sm:$0xff] %v455_v33  ;;  %v437_v36 = vmul.f32 %v581_v9, %v412_v34  ;;  %v436_v37 = vmul.f32 %v581_v9, %v410_v35 }
  0xed   : > { %v458_v38 = vadd.f32 %v582_v10, %v437_v36  ;;  %v457_v39 = vadd.f32 %v582_v10, %v436_v37 }
  0xee   : > { %v416_v40 = vpop.xlane.xlu1 %415  ;;  %v414_v41 = vpop.xlane.xlu0 %413 }
  0xef   : > { %472 = vst [vmem:[%s927_s10 + $0x48] sm:$0xff] %v458_v38  ;;  %471 = vst [vmem:[%s927_s10 + $0x40] sm:$0xff] %v457_v39  ;;  %v439_v42 = vmul.f32 %v581_v9, %v416_v40  ;;  %v438_v43 = vmul.f32 %v581_v9, %v414_v41 }
  0xf1   : > { %v460_v44 = vadd.f32 %v582_v10, %v439_v42  ;;  %v459_v45 = vadd.f32 %v582_v10, %v438_v43  ;;  %484 = sbr.rel (!%p806_p9) target bundleno = 276 (0x114), region = 40 }
  0xf2   : > { %v420_v46 = vpop.xlane.xlu1 %419  ;;  %v418_v47 = vpop.xlane.xlu0 %417 }
  0xf3   : > { %474 = vst [vmem:[%s927_s10 + $0x58] sm:$0xff] %v460_v44  ;;  %473 = vst [vmem:[%s927_s10 + $0x50] sm:$0xff] %v459_v45  ;;  %v441_v48 = vmul.f32 %v581_v9, %v420_v46  ;;  %v440_v49 = vmul.f32 %v581_v9, %v418_v47 }
  0xf5   : > { %v462_v50 = vadd.f32 %v582_v10, %v441_v48  ;;  %v461_v51 = vadd.f32 %v582_v10, %v440_v49 }
  0xf7   : > { %476 = vst [vmem:[%s927_s10 + $0x68] sm:$0xff] %v462_v50  ;;  %475 = vst [vmem:[%s927_s10 + $0x60] sm:$0xff] %v461_v51 }
  0xf8   : > { %s1023_s26 = smov (!%p487_p6, %s486_s26), 14 }
  0xf9   : > { %s947_s27 = sshll.u32 %s1023_s26, 7 }
  0xfa   : > { %s491_s28 = ssub.s32 1792, %s947_s27 }
  0xfb   : > { %492 = vsyncadd %s478_s20, %s491_s28  ;;  %p584_p10 = scmp.ne.s32.totalorder %s947_s27, 0  ;;  %s593_s23 = smul.u32 1792, %s783_s16 }
  0xfc   : > { %s497_s30 = sshll.u32 %s927_s10, 4  ;;  %s739_s17 = smov [#allocation6]   ;;  %s960_s30 = int_to_ptr.vmem [resolvable:$true] %s497_s30 }
  0xfd   : > { %s958_s8 = scalar_lea.hbm %s1009_s3, %s593_s23  ;;  %s668_s11 = scalar_lea.vmem %s960_s30, %s947_s27 }
  0xfe   : > { %p669_p9 = scmp.ne.s32.totalorder %s960_s30, %s668_s11  ;;  %s672_s19 = sshll.u32 %s739_s17, 4  ;;  %s673_s19 = int_to_ptr.vmem [resolvable:$false] %s672_s19 }
  0xff   : > { %s674_s16 = scalar_lea.vmem %s673_s19, 3584  ;;  %p675_p12 = scmp.lt.s32.totalorder %s960_s30, %s673_s19 }
 0x100   : > { %p670_p11 = pnand %p669_p9, %p584_p10  ;;  %p676_p0 = scmp.lt.s32.totalorder %s674_s16, %s668_s11 }
 0x102   : > { %p671_p13 = pneg %p670_p11  ;;  %p677_p1 = por %p676_p0, %p675_p12 }
 0x104   : > { %p678_p3 = pnand %p677_p1, %p671_p13 }
 0x106   : > { %681 = shalt.err (!%p678_p3)
}
 0x107   : > { %s682_s22 = scalar_lea.hbm %s958_s8, %s947_s27  ;;  %s686_s7 = scalar_lea.hbm %s1009_s3, 3200 }
 0x108   : > { %p683_p4 = scmp.ne.s32.totalorder %s958_s8, %s682_s22  ;;  %p687_p7 = scmp.lt.u32.totalorder %s958_s8, %s1009_s3 }
 0x109   : > { %p688_p8 = scmp.lt.u32.totalorder %s686_s7, %s682_s22  ;;  %p690_p9 = scmp.lt.u32.totalorder %s682_s22, %s958_s8 }
 0x10a   : > { %p684_p5 = pnand %p683_p4, %p584_p10 }
 0x10b   : > { %p689_p6 = por %p688_p8, %p687_p7 }
 0x10c   : > { %p685_p2 = pneg %p684_p5 }
 0x10d   : > { %p691_p11 = por %p690_p9, %p689_p6 }
 0x10f   : > { %p692_p13 = pnand %p691_p11, %p685_p2 }
 0x111   : > { %695 = shalt.err (!%p692_p13)
}
 0x112   : > { %s740_s26 = smov 128   ;;  %s741_s28 = smov 8  }
 0x113   : > { %503 = dma.vmem_to_hbm [thread:$0]  (%p584_p10), %s960_s30, %s947_s27, %s958_s8, %s478_s20, %s740_s26, %s740_s26, %s741_s28  }
 0x114 PF: > { %s512_s23 = sand.u32 1, %s722_s12   ;;  %p1014_p12 = scmp.ne.s32.totalorder %s1013_s24, 0 }
 0x115   : > { %p1015_p0 = scmp.ge.s32.totalorder %s734_s15, 2  ;;  %s513_s5 = scalar_lea.sflag [#allocation5], %s512_s23 }
 0x117   : > { %p600_p1 = pnand %p1015_p0, %p1014_p12 }
 0x119   : > { %717 = dma.done.wait (!%p600_p1), %s513_s5, 1792  }
 0x11a   : > { %719 = vsyncadd (!%p600_p1), %s513_s5, 4294965504  ;;  %p16_p3 = scmp.ge.s32.totalorder %s787_s18, 4   ;;  %s1016_s12 = smov %s726_s13 }
 0x11b   : > { %s1017_s13 = smov %s730_s14  ;;  %s1018_s14 = smov %s799_s21 }
 0x11c   : > { %s1019_s15 = smov %s787_s18  ;;  %18 = sbr.rel (!%p16_p3) target bundleno = 5 (0x5), region = 77 }
 0x123   :  { %518 = vsyncpa [#allocation4], 1 }
 0x124   :  { %520 = vsyncpa [#allocation4 + $0x1], 1 }
 0x125   :  { %521 = vsyncpa [#allocation5], 1 }
 0x126   :  { %523 = vsyncpa [#allocation5 + $0x1], 1 }

</bundles_post_ra>
